<compile_context>
chip_gen: v5e
topology: v5e:2x2
jax: 0.10.0
libtpu: 0.0.40
codegen_flags: <defaults>
</compile_context>

<pallas_src>
import math
from functools import partial

import numpy as np
import jax
import jax.numpy as jnp
from jax import lax
from jax.experimental import pallas as pl
from jax.experimental.pallas import tpu as pltpu


def _bitlen(v_i32):
    """Bit length of non-negative int32 values via the float32 exponent field.

    Exact for v < 2^24.  bitlen(0) maps to -126, which only ever feeds a
    min() clamp below, so it is harmless (and gives the intended result)."""
    f = v_i32.astype(jnp.float32)
    return jnp.right_shift(pltpu.bitcast(f, jnp.int32), 23) - 126


def _sot_kernel(x_ref, nodes_ref, codes_ref, levels_ref, new_nodes_ref, bmu_ref,
                *, depth, n_nodes, lr):
    """x_ref: (1, Dp) f32, nodes_ref: (Nsub, Dp) f32,
    codes_ref/levels_ref: (Nsub, 1) i32, bmu_ref: (1, 1) i32 in SMEM.

    codes[j]  = (j+1) << (depth - level(j))  (heap code shifted to leaf level)
    levels[j] = tree level of node j (root = 0)."""
    n_internal = (n_nodes - 1) // 2
    xv = x_ref[...]                                         # (1, Dp)

    # ---- 1) all squared distances in one vectorized lane-reduce -------------
    # (`diff` is deliberately not reused later; the update recomputes it.)
    diff = nodes_ref[...] - xv
    d = jnp.sum(diff * diff, axis=-1, keepdims=True)        # (Nsub, 1) f32

    # ---- 2) all sibling comparisons at once, packed into ONE scalar ---------
    # Children of internal node i are adjacent rows 2i+1 / 2i+2, so a
    # shift-by-one compare of d[1:] vs d[2:] yields every "go right" bit at an
    # even offset.  Pack them with power-of-two weights + one reduction; the
    # descent below then needs no dynamic VMEM loads at all.
    a = d[1:1 + 2 * n_internal, :]                          # d[2i+1] at row 2i
    b = d[2:2 + 2 * n_internal, :]                          # d[2i+2] at row 2i
    go_right = (b < a).astype(jnp.float32)                  # tie -> left (argmin)
    r = lax.broadcasted_iota(jnp.int32, (2 * n_internal, 1), 0)
    w = jnp.where((r & 1) == 0,
                  jnp.exp2((r >> 1).astype(jnp.float32)),   # 2^i at row 2i
                  jnp.float32(0.0))
    packed = jnp.sum(go_right * w).astype(jnp.int32)        # bit i = go right at node i
    # TODO(synk): for trees with > 24 internal nodes pack into multiple words.

    # ---- 3) tree descent entirely in the scalar domain ----------------------
    bmu = jnp.int32(0)
    for _ in range(depth):
        bit = jnp.bitwise_and(jnp.right_shift(packed, bmu), jnp.int32(1))
        bmu = 2 * bmu + 1 + bit
    bmu_ref[0, 0] = bmu

    # ---- 4) neighborhood state: common-prefix length of heap codes ----------
    # state[j] = #levels (1..depth) on which j's ancestor equals the BMU's,
    # i.e. common prefix of the (leaf-aligned) heap codes clamped to level(j).
    levels = levels_ref[...]                                # (Nsub, 1) i32
    xor = jnp.bitwise_xor(codes_ref[...], bmu + 1)
    state = jnp.minimum(depth - _bitlen(xor), levels)

    # ---- 5) per-node lr = lr * 2^(state - depth); root never updated --------
    lrs = jnp.float32(lr) * jnp.exp2((state - depth).astype(jnp.float32))
    lrs = jnp.where(levels == 0, jnp.float32(0.0), lrs)     # mask the root
    nodes = nodes_ref[...]                                  # fresh load (no long live range)
    new_nodes_ref[...] = nodes + lrs * (xv - nodes)


@partial(jax.jit, static_argnames=("lr",))
def sot_forward(x, nodes, lr=0.3):
    """Pallas implementation of SOT.forward for a single sample x of shape (D,).

    Returns (bmu_index of shape (1,1) int32, updated nodes of shape (N, D))."""
    N, D = nodes.shape
    leaf_num = (N + 1) // 2
    depth = int(round(math.log2(leaf_num)))
    assert N == 2 ** (depth + 1) - 1, (
        "SOT requires a perfect binary tree: N must equal 2^(depth+1) - 1")
    assert depth >= 1

    # Dense padding: features to a multiple of 128 lanes, rows to a multiple of
    # 8 sublanes.  N is odd, so Nsub >= N + 1, which the shifted sibling
    # compare in the kernel relies on.
    Dp = ((D + 127) // 128) * 128
    Nsub = ((N + 7) // 8) * 8
    assert Nsub >= N + 1
    x2 = jnp.pad(x.astype(jnp.float32).reshape(1, D), ((0, 0), (0, Dp - D)))
    nodes_p = jnp.pad(nodes.astype(jnp.float32), ((0, Nsub - N), (0, Dp - D)))

    # Static per-node heap metadata (host-side, exact integer math).
    codes = np.full((Nsub, 1), 1 << depth, dtype=np.int32)   # harmless values for pad rows
    levels = np.zeros((Nsub, 1), dtype=np.int32)
    for j in range(N):
        lj = (j + 1).bit_length() - 1                        # level of node j
        levels[j, 0] = lj
        codes[j, 0] = (j + 1) << (depth - lj)
    codes = jnp.asarray(codes)
    levels = jnp.asarray(levels)

    new_nodes_p, bmu = pl.pallas_call(
        partial(_sot_kernel, depth=depth, n_nodes=N, lr=float(lr)),
        out_shape=(jax.ShapeDtypeStruct((Nsub, Dp), jnp.float32),
                   jax.ShapeDtypeStruct((1, 1), jnp.int32)),
        in_specs=[pl.BlockSpec(memory_space=pltpu.MemorySpace.VMEM)] * 4,
        out_specs=(pl.BlockSpec(memory_space=pltpu.MemorySpace.VMEM),
                   pl.BlockSpec(memory_space=pltpu.MemorySpace.SMEM)),
        input_output_aliases={1: 0},                         # update nodes in place
        compiler_params=pltpu.CompilerParams(vmem_limit_bytes=32 * 1024 * 1024),
    )(x2, nodes_p, codes, levels)
    return bmu, new_nodes_p[:N, :D]


# ---------------- pure-numpy reference (mirrors the PyTorch code) ---------------
def _reference(x, nodes, lr):
    nodes = np.asarray(nodes, np.float32).copy()
    x = np.asarray(x, np.float32)
    N, _ = nodes.shape
    leaf_num = (N + 1) // 2
    depth = int(math.log2(leaf_num))
    lr_table = (lr * 2.0 ** np.arange(1, depth + 2, dtype=np.float32)
                / 2.0 ** (depth + 1)).astype(np.float32)

    start = 1
    layer_state = np.zeros((1, 1), dtype=np.int64)
    layers = []
    bmu_index = np.zeros((1, 1), dtype=np.int64)
    for n in range(1, depth + 1):
        npl_ = 2 ** n
        layer = np.arange(start, start + npl_)
        layer_state = np.repeat(layer_state.flatten(), 2).reshape(1, npl_)
        max_val = layer_state.max(axis=1, keepdims=True)
        competing = np.tile(layer, (1, 1))[layer_state == max_val].reshape(1, 2)
        comp_nodes = nodes[competing]                                # (1, 2, D)
        dist = np.sqrt(((comp_nodes - x[None, None, :]) ** 2).sum(axis=2))
        bmu_pos = np.argmin(dist, axis=1)
        bmu_index = competing[np.arange(1), bmu_pos][:, None]
        layer_state = layer_state + (layer[None, :] == bmu_index).astype(np.int64)
        layers.append(layer_state.copy())
        start += npl_
    indices = np.concatenate(layers, axis=1)                         # (1, N-1)
    lrs = lr_table[indices.flatten()].reshape(-1, 1)                 # (N-1, 1)
    updates = lrs * (x[None, :] - nodes[1:])
    new_nodes = nodes.copy()
    new_nodes[1:] += updates
    return int(bmu_index[0, 0]), new_nodes


if __name__ == "__main__":
    number_of_leaves = 8
    input_dim = 32
    lr = 0.3

    leaf_num = 2 ** math.ceil(math.log2(number_of_leaves))
    N = 2 * leaf_num - 1                                             # 15 nodes

    key = jax.random.PRNGKey(0)
    k_nodes, k_x = jax.random.split(key)
    nodes = jax.random.uniform(k_nodes, (N, input_dim), dtype=jnp.float32)  # U(0,1)
    x = jax.random.uniform(k_x, (input_dim,), dtype=jnp.float32)

    bmu_index, new_nodes = sot_forward(x, nodes, lr=lr)
    (bmu_index, new_nodes) = jax.block_until_ready((bmu_index, new_nodes))

    ref_bmu, ref_new_nodes = _reference(x, nodes, lr)
    assert int(np.asarray(bmu_index)[0, 0]) == ref_bmu, (
        f"BMU mismatch: {int(np.asarray(bmu_index)[0, 0])} vs {ref_bmu}")
    np.testing.assert_allclose(np.asarray(new_nodes), ref_new_nodes,
                               rtol=1e-5, atol=1e-6)
    print("KERNEL_OK")
</pallas_src>

<mosaic_0001>
module attributes {stable_mosaic.version = 11 : i64} {
  func.func @_sot_kernel(%arg0: memref<1x128xf32, #tpu.memory_space<vmem>>, %arg1: memref<16x128xf32, #tpu.memory_space<vmem>>, %arg2: memref<16x1xi32, #tpu.memory_space<vmem>>, %arg3: memref<16x1xi32, #tpu.memory_space<vmem>>, %arg4: memref<16x128xf32, #tpu.memory_space<vmem>>, %arg5: memref<1x1xi32, #tpu.memory_space<smem>>) attributes {dimension_semantics = [], scalar_prefetch = 0 : i64, scratch_operands = 0 : i64, tpu.core_type = #tpu.core_type<tc>} {
    %c0 = arith.constant 0 : index
    %c0_0 = arith.constant 0 : index
    %0 = vector.load %arg0[%c0, %c0_0] : memref<1x128xf32, #tpu.memory_space<vmem>>, vector<1x128xf32>
    %c0_1 = arith.constant 0 : index
    %c0_2 = arith.constant 0 : index
    %1 = vector.load %arg1[%c0_1, %c0_2] : memref<16x128xf32, #tpu.memory_space<vmem>>, vector<16x128xf32>
    %2 = vector.broadcast %0 : vector<1x128xf32> to vector<16x128xf32>
    %3 = arith.subf %1, %2 : vector<16x128xf32>
    %4 = arith.mulf %3, %3 : vector<16x128xf32>
    %cst = arith.constant dense<0.000000e+00> : vector<16xf32>
    %5 = vector.multi_reduction <add>, %4, %cst [1] : vector<16x128xf32> to vector<16xf32>
    %6 = vector.shape_cast %5 : vector<16xf32> to vector<16x1xf32>
    %7 = vector.extract_strided_slice %6 {offsets = [1, 0], sizes = [14, 1], strides = [1, 1]} : vector<16x1xf32> to vector<14x1xf32>
    %8 = vector.extract_strided_slice %6 {offsets = [2, 0], sizes = [14, 1], strides = [1, 1]} : vector<16x1xf32> to vector<14x1xf32>
    %9 = arith.cmpf olt, %8, %7 : vector<14x1xf32>
    %10 = arith.extui %9 : vector<14x1xi1> to vector<14x1xi32>
    %11 = arith.sitofp %10 : vector<14x1xi32> to vector<14x1xf32>
    %12 = tpu.iota {dimensions = array<i32: 0>} : vector<14x1xi32>
    %c1_i32 = arith.constant 1 : i32
    %13 = vector.broadcast %c1_i32 : i32 to vector<14x1xi32>
    %14 = arith.andi %12, %13 : vector<14x1xi32>
    %c0_i32 = arith.constant 0 : i32
    %15 = vector.broadcast %c0_i32 : i32 to vector<14x1xi32>
    %16 = arith.cmpi eq, %14, %15 : vector<14x1xi32>
    %c1_i32_3 = arith.constant 1 : i32
    %17 = vector.broadcast %c1_i32_3 : i32 to vector<14x1xi32>
    %18 = arith.shrsi %12, %17 : vector<14x1xi32>
    %19 = arith.sitofp %18 : vector<14x1xi32> to vector<14x1xf32>
    %20 = math.exp2 %19 : vector<14x1xf32>
    %cst_4 = arith.constant 0.000000e+00 : f32
    %21 = vector.broadcast %cst_4 : f32 to vector<14x1xf32>
    %22 = arith.select %16, %20, %21 : vector<14x1xi1>, vector<14x1xf32>
    %23 = arith.mulf %11, %22 : vector<14x1xf32>
    %24 = vector.shape_cast %23 : vector<14x1xf32> to vector<1x14x1xf32>
    %cst_5 = arith.constant dense<0.000000e+00> : vector<1xf32>
    %25 = vector.multi_reduction <add>, %24, %cst_5 [1, 2] : vector<1x14x1xf32> to vector<1xf32>
    %26 = vector.shape_cast %25 : vector<1xf32> to vector<1x1x1xf32>
    %27 = vector.extract %26[0, 0, 0] : f32 from vector<1x1x1xf32>
    %28 = arith.fptosi %27 : f32 to i32
    %c0_i32_6 = arith.constant 0 : i32
    %29 = arith.shrsi %28, %c0_i32_6 : i32
    %c1_i32_7 = arith.constant 1 : i32
    %30 = arith.andi %29, %c1_i32_7 : i32
    %c2_i32 = arith.constant 2 : i32
    %c0_i32_8 = arith.constant 0 : i32
    %31 = arith.muli %c2_i32, %c0_i32_8 : i32
    %c1_i32_9 = arith.constant 1 : i32
    %32 = arith.addi %31, %c1_i32_9 : i32
    %33 = arith.addi %32, %30 : i32
    %34 = arith.shrsi %28, %33 : i32
    %c1_i32_10 = arith.constant 1 : i32
    %35 = arith.andi %34, %c1_i32_10 : i32
    %c2_i32_11 = arith.constant 2 : i32
    %36 = arith.muli %c2_i32_11, %33 : i32
    %c1_i32_12 = arith.constant 1 : i32
    %37 = arith.addi %36, %c1_i32_12 : i32
    %38 = arith.addi %37, %35 : i32
    %39 = arith.shrsi %28, %38 : i32
    %c1_i32_13 = arith.constant 1 : i32
    %40 = arith.andi %39, %c1_i32_13 : i32
    %c2_i32_14 = arith.constant 2 : i32
    %41 = arith.muli %c2_i32_14, %38 : i32
    %c1_i32_15 = arith.constant 1 : i32
    %42 = arith.addi %41, %c1_i32_15 : i32
    %43 = arith.addi %42, %40 : i32
    %c0_16 = arith.constant 0 : index
    %c0_17 = arith.constant 0 : index
    %44 = memref.load %arg5[%c0_16, %c0_17] : memref<1x1xi32, #tpu.memory_space<smem>>
    memref.store %43, %arg5[%c0_16, %c0_17] : memref<1x1xi32, #tpu.memory_space<smem>>
    %c0_18 = arith.constant 0 : index
    %c0_19 = arith.constant 0 : index
    %45 = vector.load %arg3[%c0_18, %c0_19] : memref<16x1xi32, #tpu.memory_space<vmem>>, vector<16x1xi32>
    %c0_20 = arith.constant 0 : index
    %c0_21 = arith.constant 0 : index
    %46 = vector.load %arg2[%c0_20, %c0_21] : memref<16x1xi32, #tpu.memory_space<vmem>>, vector<16x1xi32>
    %c1_i32_22 = arith.constant 1 : i32
    %47 = arith.addi %43, %c1_i32_22 : i32
    %48 = vector.broadcast %47 : i32 to vector<16x1xi32>
    %49 = arith.xori %46, %48 : vector<16x1xi32>
    %50 = arith.sitofp %49 : vector<16x1xi32> to vector<16x1xf32>
    %51 = tpu.bitcast %50 : vector<16x1xf32> -> vector<16x1xi32>
    %c23_i32 = arith.constant 23 : i32
    %52 = vector.broadcast %c23_i32 : i32 to vector<16x1xi32>
    %53 = arith.shrsi %51, %52 : vector<16x1xi32>
    %c126_i32 = arith.constant 126 : i32
    %54 = vector.broadcast %c126_i32 : i32 to vector<16x1xi32>
    %55 = arith.subi %53, %54 : vector<16x1xi32>
    %c3_i32 = arith.constant 3 : i32
    %56 = vector.broadcast %c3_i32 : i32 to vector<16x1xi32>
    %57 = arith.subi %56, %55 : vector<16x1xi32>
    %58 = arith.minsi %57, %45 : vector<16x1xi32>
    %c3_i32_23 = arith.constant 3 : i32
    %59 = vector.broadcast %c3_i32_23 : i32 to vector<16x1xi32>
    %60 = arith.subi %58, %59 : vector<16x1xi32>
    %61 = arith.sitofp %60 : vector<16x1xi32> to vector<16x1xf32>
    %62 = math.exp2 %61 : vector<16x1xf32>
    %cst_24 = arith.constant 3.000000e-01 : f32
    %63 = vector.broadcast %cst_24 : f32 to vector<16x1xf32>
    %64 = arith.mulf %63, %62 : vector<16x1xf32>
    %c0_i32_25 = arith.constant 0 : i32
    %65 = vector.broadcast %c0_i32_25 : i32 to vector<16x1xi32>
    %66 = arith.cmpi eq, %45, %65 : vector<16x1xi32>
    %cst_26 = arith.constant 0.000000e+00 : f32
    %67 = vector.broadcast %cst_26 : f32 to vector<16x1xf32>
    %68 = arith.select %66, %67, %64 : vector<16x1xi1>, vector<16x1xf32>
    %c0_27 = arith.constant 0 : index
    %c0_28 = arith.constant 0 : index
    %69 = vector.load %arg1[%c0_27, %c0_28] : memref<16x128xf32, #tpu.memory_space<vmem>>, vector<16x128xf32>
    %70 = vector.broadcast %0 : vector<1x128xf32> to vector<16x128xf32>
    %71 = arith.subf %70, %69 : vector<16x128xf32>
    %72 = vector.broadcast %68 : vector<16x1xf32> to vector<16x128xf32>
    %73 = arith.mulf %72, %71 : vector<16x128xf32>
    %74 = arith.addf %69, %73 : vector<16x128xf32>
    %c0_29 = arith.constant 0 : index
    %c0_30 = arith.constant 0 : index
    %75 = vector.load %arg4[%c0_29, %c0_30] : memref<16x128xf32, #tpu.memory_space<vmem>>, vector<16x128xf32>
    tpu.vector_store %arg4[%c0_29, %c0_30], %74 {strides = array<i32>} : memref<16x128xf32, #tpu.memory_space<vmem>>, vector<16x128xf32>,
    return
  }
}

</mosaic_0001>

<bundles_post_ra>
// kernel: sot_forward.1
= control target key start
LH: loop header
LB: loop body
LE: loop exit
PB: predicated region body
PF: predicated region fallthrough
CT: control target
= control target key end

     0   :  { %s308_s0 = inlined_call_operand.vmem [shape: f32[1,128], index: 0, kind: input, shape index: {}]   ;;  %s309_s1 = inlined_call_operand.vmem [shape: f32[16,128], index: 1, kind: input, shape index: {}, may-alias: {1,4}]   ;;  %s310_s2 = inlined_call_operand.vmem [shape: s32[16,1], index: 2, kind: input, shape index: {}]   ;;  %s311_s3 = inlined_call_operand.vmem [shape: s32[16,1], index: 3, kind: input, shape index: {}]   ;;  %s312_s4 = inlined_call_operand.vmem [shape: f32[16,128], index: 4, kind: output, shape index: {0}, may-alias: {1,4}]   ;;  %s313_s5 = inlined_call_operand.hbm [shape: s32[1,1], index: 5, kind: output, shape index: {1}]  }
   0x1   :  { %v265_v0 = vld [vmem:[%s309_s1] sm:$0xff] }
   0x2   :  { %v270_v1 = vld [vmem:[%s308_s0] ss:$0 sm:$0xff] }
   0x3   :  { %11 = vsyncpa [#allocation3], 0  ;;  %v26_v2 = vsub.f32 %v265_v0, %v270_v1  ;;  %v277_v3 = vld [vmem:[%s309_s1 + $0x8] sm:$0xff]  ;;  %v48_v7 = vlaneseq  ;;  %vm36_vm3 = vcmask 1040384   ;;  %vm65_vm4 = vcmask 1041408   ;;  %v112_v48 = vld [vmem:[%s310_s2] sm:$0xff] }
   0x4   :  { %v27_v5 = vsub.f32 %v277_v3, %v270_v1  ;;  %v229_v25 = vmov 0.0   ;;  %vm75_vm6 = vcmask 1045504   ;;  %vm83_vm7 = vcmask 5120   ;;  %v113_v47 = vld [vmem:[%s310_s2 + $0x8] sm:$0xff]  ;;  %v110_v59 = vld [vmem:[%s311_s3] sm:$0xff] }
   0x5   :  { %v28_v4 = vmul.f32 %v26_v2, %v26_v2  ;;  %v49_v8 = vshrl.u32 %v48_v7, 7  ;;  %vm81_vm8 = vcmask 7168   ;;  %v230_v46 = vmov 0   ;;  %v111_v58 = vld [vmem:[%s311_s3 + $0x8] sm:$0xff] }
   0x6   :  { %v29_v6 = vmul.f32 %v27_v5, %v27_v5  ;;  %204 = vset.pattern.permute.xlu2 %v230_v46  ;;  %203 = vset.pattern.permute.xlu1 %v230_v46  ;;  %vm141_vm11 = vcmp.eq.s32.totalorder %v111_v58, 0  ;;  %vm140_vm12 = vcmp.eq.s32.totalorder %v110_v59, 0 }
   0x7   :  { %30 = vadd.xlane.f32.xlu0 %v28_v4  ;;  %v50_v9 = vadd.s32 8, %v49_v8  ;;  %v55_v11 = vshra.s32 %v49_v8, 1  ;;  %v51_v15 = vand.u32 1, %v49_v8 }
   0x8   :  { %205 = vset.pattern.permute.xlu0 %v230_v46 }
   0x9   :  { %v56_v10 = vshra.s32 %v50_v9, 1  ;;  %v57_v13 = vcvt.s32.f32 %v55_v11  ;;  %v52_v14 = vand.u32 1, %v50_v9  ;;  %vm53_vm1 = vcmp.eq.s32.totalorder %v51_v15, 0 }
   0xb   :  { %v58_v12 = vcvt.s32.f32 %v56_v10  ;;  %vm54_vm0 = vcmp.eq.s32.totalorder %v52_v14, 0 }
   0xd   :  { %207 = vpow2.f32 %v58_v12 }
   0xe   :  { %209 = vpow2.f32 %v57_v13  ;;  %v147_v13 = vsub.f32 %v270_v1, %v277_v3 }
   0xf   :  { %32 = vadd.xlane.f32.xlu0 %v29_v6 }
  0x13   :  { %v208_v17 = vpop.eup %207 }
  0x14   :  { %v210_v18 = vpop.eup %209  ;;  %v62_v20 = vsel %vm54_vm0, %v208_v17, 0.0  ;;  %v146_v17 = vsub.f32 %v270_v1, %v265_v0 }
  0x15   :  { %v61_v21 = vsel %vm53_vm1, %v210_v18, 0.0  ;;  %v67_v22 = vrot.slane %v62_v20, 6 }
  0x16   :  { %v66_v23 = vrot.slane %v61_v21, 6 }
  0x18   :  { %v68_v28 = vsel %vm65_vm4, %v66_v23, %v67_v22 }
  0x7a   :  { %v31_v16 = vpop.xlane.xlu0 %30 }
  0x7b   :  { %v37_v19 = vrot.slane %v31_v16, 7 }
  0x7d   :  { %vm42_vm2 = vcmp.lt.f32.partialorder %v31_v16, %v37_v19 }
  0x7e   :  { %v183_v26 = vsel %vm42_vm2, 1.0, %v229_v25 }
  0x7f   :  { %v71_v30 = vmul.f32 %v183_v26, %v66_v23 }
  0x81   :  { %v76_v33 = vrot.slane %v71_v30, 2 }
  0x82   :  { %v33_v24 = vpop.xlane.xlu0 %32 }
  0x83   :  { %v38_v27 = vrot.slane %v33_v24, 7 }
  0x85   :  { %v39_v29 = vsel %vm36_vm3, %v37_v19, %v38_v27 }
  0x86   :  { %vm43_vm5 = vcmp.lt.f32.partialorder %v33_v24, %v39_v29 }
  0x87   :  { %v184_v31 = vsel %vm43_vm5, 1.0, %v229_v25 }
  0x88   :  { %v72_v32 = vmul.f32 %v184_v31, %v68_v28 }
  0x8a   :  { %v77_v34 = vrot.slane %v72_v32, 2 }
  0x8c   :  { %v78_v35 = vsel %vm75_vm6, %v76_v33, %v77_v34  ;;  %v84_v36 = vsel %vm83_vm7, %v77_v34, 0.0 }
  0x8d   :  { %v82_v37 = vsel %vm81_vm8, %v78_v35, 0.0 }
  0x8e   :  { %v85_v38 = vadd.f32 %v84_v36, %v82_v37 }
  0x90   :  { %86 = vadd.xlane.f32.xlu1 %v85_v38 }
 0x103   :  { %v87_v39 = vpop.xlane.xlu1 %86 }
 0x104   :  { %v88_v40 = vrot.slane %v87_v39, 4 }
 0x106   :  { %v89_v41 = vadd.f32 %v88_v40, %v87_v39 }
 0x108   :  { %v90_v42 = vrot.slane %v89_v41, 2 }
 0x10a   :  { %v91_v43 = vadd.f32 %v90_v42, %v89_v41 }
 0x10c   :  { %v92_v44 = vrot.slane %v91_v43, 1 }
 0x10e   :  { %v93_v45 = vadd.f32 %v92_v44, %v91_v43 }
 0x110   :  { %193 = vpush %v93_v45 }
 0x141   :  { %s194_s0 = spop %193 }
 0x142   :  { %p195_p0 = scmp.lt.s32.totalorder %s194_s0, 0  ;;  %s196_s1 = sceil.f32 %s194_s0 }
 0x143   :  { %s197_s24 = sfloor.f32 %s194_s0  ;;  %s171_s0 = sshll.u32 %s313_s5, 4  ;;  %s172_s0 = int_to_ptr.hbm [resolvable:$true] %s171_s0 }
 0x144   :  { %s315_s1 = smov (!%p195_p0, %s196_s1), %s197_s24 }
 0x145   :  { %s199_s25 = scvt.f32.s32 %s315_s1  ;;  %s231_s1 = smov [#allocation2]  }
 0x147   :  { %s96_s26 = sand.u32 1, %s199_s25 }
 0x148   :  { %s97_s27 = sadd.s32 1, %s96_s26  ;;  %s191_s28 = sshll.u32 %s96_s26, 1 }
 0x149   :  { %s98_s29 = sshra.s32 %s199_s25, %s97_s27  ;;  %s192_s30 = sadd.s32 2, %s191_s28 }
 0x14a   :  { %s99_s6 = sand.u32 1, %s98_s29  ;;  %s101_s7 = sadd.s32 1, %s192_s30 }
 0x14b   :  { %s102_s8 = sadd.s32 %s101_s7, %s99_s6 }
 0x14c   :  { %s103_s9 = sshra.s32 %s199_s25, %s102_s8  ;;  %s186_s10 = sshll.u32 %s102_s8, 1 }
 0x14d   :  { %s104_s11 = sand.u32 1, %s103_s9  ;;  %s106_s12 = sadd.s32 1, %s186_s10 }
 0x14e   :  { %s107_s13 = sadd.s32 %s106_s12, %s104_s11 }
 0x14f   :  { %s114_s18 = sadd.s32 1, %s107_s13  ;;  %109 = sst [smem:[#allocation2]] %s107_s13 }
 0x150   :  { %v115_v49 = vstv %s114_s18  ;;  %174 = dma.smem_to_hbm %s231_s1, 16, %s172_s0, [#allocation3]  }
 0x151   :  { %v117_v50 = vxor.u32 %v115_v49, %v113_v47  ;;  %v116_v51 = vxor.u32 %v115_v49, %v112_v48 }
 0x153   :  { %v119_v52 = vcvt.s32.f32 %v117_v50  ;;  %v118_v53 = vcvt.s32.f32 %v116_v51 }
 0x155   :  { %v123_v54 = vshra.s32 %v119_v52, 23  ;;  %v122_v55 = vshra.s32 %v118_v53, 23 }
 0x157   :  { %v188_v56 = vadd.s32 4294967170, %v123_v54  ;;  %v187_v57 = vadd.s32 4294967170, %v122_v55 }
 0x159   :  { %v127_v60 = vsub.s32 3, %v188_v56  ;;  %v126_v61 = vsub.s32 3, %v187_v57 }
 0x15b   :  { %vm130_vm9 = vcmp.lt.s32.totalorder %v127_v60, %v111_v58  ;;  %vm128_vm10 = vcmp.lt.s32.totalorder %v126_v61, %v110_v59 }
 0x15c   :  { %v131_v62 = vsel %vm130_vm9, %v127_v60, %v111_v58  ;;  %v129_v63 = vsel %vm128_vm10, %v126_v61, %v110_v59 }
 0x15d   :  { %v190_v2 = vadd.s32 4294967293, %v131_v62  ;;  %v189_v4 = vadd.s32 4294967293, %v129_v63 }
 0x15f   :  { %v135_v5 = vcvt.s32.f32 %v190_v2  ;;  %v134_v6 = vcvt.s32.f32 %v189_v4 }
 0x161   :  { %211 = vpow2.f32 %v135_v5 }
 0x162   :  { %213 = vpow2.f32 %v134_v6 }
 0x167   :  { %v212_v7 = vpop.eup %211 }
 0x168   :  { %v214_v8 = vpop.eup %213  ;;  %v139_v9 = vmul.f32 0.3, %v212_v7 }
 0x169   :  { %v138_v10 = vmul.f32 0.3, %v214_v8 }
 0x16a   :  { %v143_v11 = vsel %vm141_vm11, 0.0, %v139_v9 }
 0x16b   :  { %155 = vperm.xlu2 %204, %v143_v11   ;;  %v142_v12 = vsel %vm140_vm12, 0.0, %v138_v10 }
 0x16c   :  { %150 = vperm.xlu1 %203, %v142_v12  }
 0x1c5   :  { %v156_v14 = vpop.permute.xlu2 %155 }
 0x1c6   :  { %v159_v15 = vmul.f32 %v156_v14, %v147_v13 }
 0x1c8   :  { %v161_v16 = vadd.f32 %v159_v15, %v277_v3 }
 0x1ca   :  { %163 = vst [vmem:[%s312_s4 + $0x8] sm:$0xff] %v161_v16 }
 0x1de   :  { %v151_v18 = vpop.permute.xlu1 %150 }
 0x1df   :  { %v158_v19 = vmul.f32 %v151_v18, %v146_v17 }
 0x1e1   :  { %v160_v20 = vadd.f32 %v158_v19, %v265_v0 }
 0x1e3   :  { %162 = vst [vmem:[%s312_s4] sm:$0xff] %v160_v20 }
 0x1e4   :  { %227 = dma.done.wait [#allocation3], 16  }
 0x1e5   :  { %228 = vsyncadd [#allocation3], 4294967280 }
 0x1e6   :  { %181 = sfence }
 0x1e7   :  { %182 = vsyncpa [#allocation3], 1 }

</bundles_post_ra>
